<compile_context>
chip_gen: v6e
topology: v6e:2x2x1
jax: 0.10.0
libtpu: 0.0.40
codegen_flags: <defaults>
</compile_context>

<pallas_src>
import functools

import numpy as np
import jax
import jax.numpy as jnp
from jax.scipy.linalg import expm
from jax.experimental import pallas as pl
from jax.experimental.pallas import tpu as pltpu


# ---------------------------------------------------------------------------
# Pallas kernel: fused block-diagonal Lie transform.
#
# For representation r (all tiles carry the batch on the lane axis):
#     x_r : (n_comps_r, k_r, TB)      g_r : (k_r, k_r, TB)
#     out_r[c, i, b] = sum_j g_r[i, j, b] * x_r[c, j, b]
# All representations are processed in one pallas_call sharing the batch grid,
# so one pipeline step streams every block for TB batch rows.
# ---------------------------------------------------------------------------
def _lie_blocks_kernel(*refs, n_reps, kdims):
    x_refs = refs[:n_reps]
    g_refs = refs[n_reps:2 * n_reps]
    o_refs = refs[2 * n_reps:3 * n_reps]
    for x_ref, g_ref, o_ref, k in zip(x_refs, g_refs, o_refs, kdims):
        x = x_ref[...]                                  # (n_comps, k, TB)
        g = g_ref[...]                                  # (k, k, TB)
        # Unroll the tiny static contraction dim j: k lane-wise mul-adds on
        # (n_comps, k_i, TB) tiles.  No 4-D intermediate, no sublane reduce.
        acc = None
        for j in range(k):
            term = g[None, :, j, :] * x[:, j, :][:, None, :]   # (n_comps, k_i, TB)
            acc = term if acc is None else acc + term
        o_ref[...] = acc


def _pick_batch_tile(batch, per_row_f32):
    """Largest lane-dense batch tile whose double-buffered footprint stays
    well under the smallest default scoped-VMEM limit (16 MiB on v5e;
    v7x physical VMEM is only 64 MiB)."""
    step_budget_bytes = 4 * 1024 * 1024            # pre double-buffering
    rows = max(1, step_budget_bytes // max(per_row_f32 * 4, 1))
    if rows >= batch:
        return batch                               # one tile spans the batch
    tb = (rows // 128) * 128                       # keep lane axis 128-aligned
    return max(tb, 128)


def lie_block_transform(x_blocks, g_blocks):
    """x_blocks[r]: (n_comps_r, k_r, B) f32; g_blocks[r]: (k_r, k_r, B) f32.
    Returns the transformed blocks with the same shapes as x_blocks."""
    n_reps = len(x_blocks)
    batch = x_blocks[0].shape[-1]
    per_row = sum(2 * xb.shape[0] * xb.shape[1] + gb.shape[0] * gb.shape[1]
                  for xb, gb in zip(x_blocks, g_blocks))
    tb = _pick_batch_tile(batch, per_row)
    grid = (pl.cdiv(batch, tb),)

    def spec(a):
        # Last two block dims equal the full (k, B-tile) extents; batch is the
        # lane axis, tiled by the grid.
        return pl.BlockSpec((a.shape[0], a.shape[1], tb), lambda i: (0, 0, i))

    in_specs = [spec(a) for a in x_blocks] + [spec(a) for a in g_blocks]
    out_specs = [spec(a) for a in x_blocks]
    out_shape = tuple(jax.ShapeDtypeStruct(a.shape, a.dtype) for a in x_blocks)

    flops = sum(2 * xb.shape[0] * xb.shape[1] * gb.shape[0] * batch
                for xb, gb in zip(x_blocks, g_blocks))
    bytes_accessed = 4 * per_row * batch
    kdims = tuple(gb.shape[0] for gb in g_blocks)

    kern = functools.partial(_lie_blocks_kernel, n_reps=n_reps, kdims=kdims)
    outs = pl.pallas_call(
        kern,
        out_shape=out_shape,
        grid=grid,
        in_specs=in_specs,
        out_specs=out_specs,
        compiler_params=pltpu.CompilerParams(
            dimension_semantics=("parallel",)),       # batch axis -> both TCs on v7x
        cost_estimate=pl.CostEstimate(
            flops=flops, transcendentals=0, bytes_accessed=bytes_accessed),
    )(*x_blocks, *g_blocks)
    return list(outs)


# ---------------------------------------------------------------------------
# Parameter construction / JAX glue (mirrors LieGenerator.__init__ & sampling)
# ---------------------------------------------------------------------------
def _so_basis(n):
    """Standard basis of so(n): n*(n-1)/2 antisymmetric generators."""
    mats = []
    for i in range(n):
        for j in range(i + 1, n):
            m = np.zeros((n, n), dtype=np.float32)
            m[i, j] = 1.0
            m[j, i] = -1.0
            mats.append(m)
    return np.stack(mats, axis=0)


class LieGeneratorPallas:
    """JAX/Pallas port of LieGenerator (forward pass only)."""

    def __init__(self, param_key, **kwargs):
        self.repr_str = kwargs['repr']
        self.uniform_max = kwargs['uniform_max']
        self.coef_dist = kwargs['coef_dist']
        self.sigma_init = kwargs['sigma_init']
        self.int_param = kwargs['int_param']
        self.int_param_noise = kwargs['int_param_noise']
        self.int_param_max = kwargs['int_param_max']
        self.keep_center = kwargs['keep_center']
        self.activated_channel = None

        self.Li, self.masks, self.sigma = [], [], []
        self.n_comps, self.n_channels, self.learnable = [], [], []
        self.n_dims = 0

        reps = []
        for t in self.repr_str.split(';'):
            t = t.strip()
            if t.startswith('(') and t.endswith(')'):
                reps.append(tuple(e.strip() for e in t[1:-1].split(',')))

        for r in reps:
            if len(r) == 3:
                n_comps, n_channels, n_dims = int(r[0]), int(r[1]), int(r[2])
                param_key, sub = jax.random.split(param_key)
                Li = jax.random.normal(sub, (n_channels, n_dims, n_dims),
                                       jnp.float32)
                self.Li.append(Li)
                self.masks.append(jnp.ones_like(Li))
                self.n_comps.append(n_comps)
                self.n_channels.append(n_channels)
                self.learnable.append(True)
                self.n_dims += n_dims * n_comps
                self.sigma.append(
                    jnp.eye(n_channels, dtype=jnp.float32) * self.sigma_init)
            elif len(r) == 1:
                n_comps = int(r[0])
                self.Li.append(jnp.zeros((1, n_comps, n_comps), jnp.float32))
                self.masks.append(None)
                self.n_comps.append(1)
                self.n_channels.append(1)
                self.learnable.append(False)
                self.n_dims += n_comps
                self.sigma.append(jnp.eye(1, dtype=jnp.float32))
            elif len(r) == 2:
                n_comps, group_str = int(r[0]), r[1]
                self.masks.append(None)
                if group_str == 'so2':
                    self.Li.append(
                        jnp.asarray([[[0.0, 1.0], [-1.0, 0.0]]], jnp.float32))
                    self.n_channels.append(1)
                    self.n_dims += n_comps * 2
                    self.sigma.append(
                        jnp.eye(1, dtype=jnp.float32) * self.sigma_init)
                elif group_str == 'so2*r':
                    self.Li.append(jnp.asarray(
                        [[[0.0, 1.0], [-1.0, 0.0]],
                         [[0.1, 0.0], [0.0, 0.1]]], jnp.float32))
                    self.n_channels.append(2)
                    self.n_dims += n_comps * 2
                    self.sigma.append(
                        jnp.eye(2, dtype=jnp.float32) * self.sigma_init)
                elif group_str == 'so3':
                    self.Li.append(jnp.asarray(_so_basis(3)))
                    self.n_channels.append(3)
                    self.n_dims += n_comps * 3
                    self.sigma.append(
                        jnp.eye(3, dtype=jnp.float32) * self.sigma_init)
                elif group_str == 'so3+1':
                    L = np.zeros((3, 4, 4), np.float32)
                    L[:, :3, :3] = _so_basis(3)
                    self.Li.append(jnp.asarray(L))
                    self.n_channels.append(3)
                    self.n_dims += n_comps * 4
                    self.sigma.append(
                        jnp.eye(3, dtype=jnp.float32) * self.sigma_init)
                elif group_str == 'so4':
                    self.Li.append(jnp.asarray(_so_basis(4)))
                    self.n_channels.append(6)
                    self.n_dims += n_comps * 4
                    self.sigma.append(
                        jnp.eye(6, dtype=jnp.float32) * self.sigma_init)
                else:
                    raise ValueError(f'Group {group_str} not implemented yet.')
                self.n_comps.append(n_comps)
                self.learnable.append(False)
            else:
                raise ValueError(f'Invalid representation tuple: {r}')

    # -- coefficient sampling ------------------------------------------------
    def _sample_coefficient(self, key, batch_size, n_channels, params):
        if self.coef_dist == 'normal':
            z = jax.random.normal(key, (batch_size, n_channels),
                                  jnp.float32) @ params
        elif self.coef_dist == 'uniform':
            z = jax.random.uniform(key, (batch_size, n_channels),
                                   jnp.float32) * 2 * params - params
        elif self.coef_dist == 'uniform_int_grid':
            z = jax.random.randint(key, (batch_size, n_channels),
                                   -int(self.uniform_max),
                                   int(self.uniform_max)).astype(jnp.float32)
        else:
            raise ValueError(self.coef_dist)
        if self.activated_channel is not None:
            mask = jnp.zeros_like(z).at[:, self.activated_channel].set(1.0)
            z = z * mask
        return z

    # -- per-representation group elements (compact blocks) -------------------
    def sample_group_blocks(self, key, batch_size):
        """List of (g_z, n_comps) with g_z: (B, k, k) float32."""
        blocks = []
        for Li, mask, sigma, n_comps, n_channels, learnable in zip(
                self.Li, self.masks, self.sigma, self.n_comps,
                self.n_channels, self.learnable):
            if learnable and self.int_param:
                key, nk = jax.random.split(key)
                noise = jax.random.normal(nk, Li.shape,
                                          jnp.float32) * self.int_param_noise
                k = self.int_param_max
                Li = jnp.round(jnp.clip(k * (Li + noise), -k - 0.49, k + 0.49))
            if learnable and mask is not None:
                Li = Li * mask
            key, zk = jax.random.split(key)
            z = self._sample_coefficient(zk, batch_size, n_channels, sigma)
            A = jnp.einsum('bj,jkl->bkl', z, Li)          # (B, k, k)
            g_z = jax.vmap(expm)(A)                       # matrix_exp, batched
            blocks.append((g_z, n_comps))
        return blocks

    def sample_group_element(self, key, batch_size):
        """Dense (B, D, D) block-diagonal group element (reference parity)."""
        blocks = self.sample_group_blocks(key, batch_size)
        g = jnp.zeros((batch_size, self.n_dims, self.n_dims), jnp.float32)
        start = 0
        for g_z, n_comps in blocks:
            kdim = g_z.shape[1]
            for _ in range(n_comps):
                g = g.at[:, start:start + kdim, start:start + kdim].set(g_z)
                start += kdim
        return g

    # -- forward --------------------------------------------------------------
    def __call__(self, x, key):
        # TODO(synk): 3-D (B, T, D) input path (per-feature mean + flatten) not
        # exercised here; the kernel implements the flat (B, n_dims) path.
        # TODO(synk): optional bf16 streaming of the g blocks (halves HBM
        # bytes on v6e/v7x) is a precision trade-off left at f32 here.
        assert x.ndim == 2 and x.shape[1] == self.n_dims
        B = x.shape[0]
        blocks = self.sample_group_blocks(key, B)

        # Global batch mean hoisted out of the kernel (batch is grid-tiled).
        if self.keep_center:
            xc, x_mean = x, None
        else:
            x_mean = jnp.mean(x, axis=0, keepdims=True)
            xc = x - x_mean

        # Slab the latent vector per representation; batch goes on the lane
        # (last) axis for lane-dense loads/stores inside the kernel.
        x_slabs, g_slabs, spans = [], [], []
        start = 0
        for g_z, n_comps in blocks:
            kdim = g_z.shape[1]
            span = n_comps * kdim
            slab = xc[:, start:start + span].reshape(B, n_comps, kdim)
            x_slabs.append(jnp.transpose(slab, (1, 2, 0)))   # (n_comps, k, B)
            g_slabs.append(jnp.transpose(g_z, (1, 2, 0)))    # (k, k, B)
            spans.append(span)
            start += span

        outs = lie_block_transform(x_slabs, g_slabs)

        pieces = [jnp.transpose(o, (2, 0, 1)).reshape(B, s)
                  for o, s in zip(outs, spans)]
        x_t = jnp.concatenate(pieces, axis=1)
        if not self.keep_center:
            x_t = x_t + x_mean
        return x_t


# ---------------------------------------------------------------------------
if __name__ == "__main__":
    cfg = dict(
        repr='(2, 2, 4); (4, so2)',   # n_dims = 2*4 + 4*2 = 16
        uniform_max=1.0,
        coef_dist='normal',
        task='toy',
        sigma_init=0.3,
        int_param=False,
        int_param_noise=0.1,
        int_param_max=2,
        gan_st_thresh=0.0,
        keep_center=False,
        device=None,
    )
    gen = LieGeneratorPallas(jax.random.PRNGKey(0), **cfg)

    B = 8
    xkey, zkey = jax.random.split(jax.random.PRNGKey(1))
    x = jax.random.normal(xkey, (B, gen.n_dims), jnp.float32)

    out = gen(x, zkey)
    out = jax.block_until_ready(out)

    # Pure-JAX dense reference with the same sampled group element (same key
    # -> same RNG consumption -> identical blocks).
    g_ref = gen.sample_group_element(zkey, B)
    x_mean = jnp.mean(x, axis=0, keepdims=True)
    ref = jnp.einsum('bij,bj->bi', g_ref, x - x_mean) + x_mean

    assert out.shape == x.shape
    np.testing.assert_allclose(np.asarray(out), np.asarray(ref),
                               rtol=1e-5, atol=1e-5)
    print("KERNEL_OK")
</pallas_src>

<mosaic_0001>
module attributes {stable_mosaic.version = 11 : i64} {
  func.func @_lie_blocks_kernel(%arg0: i32, %arg1: memref<2x4x8xf32, #tpu.memory_space<vmem>>, %arg2: memref<4x2x8xf32, #tpu.memory_space<vmem>>, %arg3: memref<4x4x8xf32, #tpu.memory_space<vmem>>, %arg4: memref<2x2x8xf32, #tpu.memory_space<vmem>>, %arg5: memref<2x4x8xf32, #tpu.memory_space<vmem>>, %arg6: memref<4x2x8xf32, #tpu.memory_space<vmem>>) attributes {dimension_semantics = [#tpu.dimension_semantics<parallel>], iteration_bounds = array<i64: 1>, scalar_prefetch = 0 : i64, scratch_operands = 0 : i64, tpu.core_type = #tpu.core_type<tc>, window_params = [{transform_indices = @transform_0, window_bounds = array<i64: 2, 4, 8>}, {transform_indices = @transform_1, window_bounds = array<i64: 4, 2, 8>}, {transform_indices = @transform_2, window_bounds = array<i64: 4, 4, 8>}, {transform_indices = @transform_3, window_bounds = array<i64: 2, 2, 8>}, {transform_indices = @transform_4, window_bounds = array<i64: 2, 4, 8>}, {transform_indices = @transform_5, window_bounds = array<i64: 4, 2, 8>}]} {
    %c0 = arith.constant 0 : index
    %c0_0 = arith.constant 0 : index
    %c0_1 = arith.constant 0 : index
    %0 = vector.load %arg1[%c0, %c0_0, %c0_1] : memref<2x4x8xf32, #tpu.memory_space<vmem>>, vector<2x4x8xf32>
    %c0_2 = arith.constant 0 : index
    %c0_3 = arith.constant 0 : index
    %c0_4 = arith.constant 0 : index
    %1 = vector.load %arg3[%c0_2, %c0_3, %c0_4] : memref<4x4x8xf32, #tpu.memory_space<vmem>>, vector<4x4x8xf32>
    %2 = vector.extract_strided_slice %1 {offsets = [0, 0, 0], sizes = [4, 1, 8], strides = [1, 1, 1]} : vector<4x4x8xf32> to vector<4x1x8xf32>
    %3 = vector.shape_cast %2 : vector<4x1x8xf32> to vector<4x8xf32>
    %4 = vector.shape_cast %3 : vector<4x8xf32> to vector<1x4x8xf32>
    %5 = vector.extract_strided_slice %0 {offsets = [0, 0, 0], sizes = [2, 1, 8], strides = [1, 1, 1]} : vector<2x4x8xf32> to vector<2x1x8xf32>
    %6 = vector.shape_cast %5 : vector<2x1x8xf32> to vector<2x8xf32>
    %7 = vector.shape_cast %6 : vector<2x8xf32> to vector<2x1x8xf32>
    %8 = vector.broadcast %4 : vector<1x4x8xf32> to vector<2x4x8xf32>
    %9 = vector.broadcast %7 : vector<2x1x8xf32> to vector<2x4x8xf32>
    %10 = arith.mulf %8, %9 : vector<2x4x8xf32>
    %11 = vector.extract_strided_slice %1 {offsets = [0, 1, 0], sizes = [4, 1, 8], strides = [1, 1, 1]} : vector<4x4x8xf32> to vector<4x1x8xf32>
    %12 = vector.shape_cast %11 : vector<4x1x8xf32> to vector<4x8xf32>
    %13 = vector.shape_cast %12 : vector<4x8xf32> to vector<1x4x8xf32>
    %14 = vector.extract_strided_slice %0 {offsets = [0, 1, 0], sizes = [2, 1, 8], strides = [1, 1, 1]} : vector<2x4x8xf32> to vector<2x1x8xf32>
    %15 = vector.shape_cast %14 : vector<2x1x8xf32> to vector<2x8xf32>
    %16 = vector.shape_cast %15 : vector<2x8xf32> to vector<2x1x8xf32>
    %17 = vector.broadcast %13 : vector<1x4x8xf32> to vector<2x4x8xf32>
    %18 = vector.broadcast %16 : vector<2x1x8xf32> to vector<2x4x8xf32>
    %19 = arith.mulf %17, %18 : vector<2x4x8xf32>
    %20 = arith.addf %10, %19 : vector<2x4x8xf32>
    %21 = vector.extract_strided_slice %1 {offsets = [0, 2, 0], sizes = [4, 1, 8], strides = [1, 1, 1]} : vector<4x4x8xf32> to vector<4x1x8xf32>
    %22 = vector.shape_cast %21 : vector<4x1x8xf32> to vector<4x8xf32>
    %23 = vector.shape_cast %22 : vector<4x8xf32> to vector<1x4x8xf32>
    %24 = vector.extract_strided_slice %0 {offsets = [0, 2, 0], sizes = [2, 1, 8], strides = [1, 1, 1]} : vector<2x4x8xf32> to vector<2x1x8xf32>
    %25 = vector.shape_cast %24 : vector<2x1x8xf32> to vector<2x8xf32>
    %26 = vector.shape_cast %25 : vector<2x8xf32> to vector<2x1x8xf32>
    %27 = vector.broadcast %23 : vector<1x4x8xf32> to vector<2x4x8xf32>
    %28 = vector.broadcast %26 : vector<2x1x8xf32> to vector<2x4x8xf32>
    %29 = arith.mulf %27, %28 : vector<2x4x8xf32>
    %30 = arith.addf %20, %29 : vector<2x4x8xf32>
    %31 = vector.extract_strided_slice %1 {offsets = [0, 3, 0], sizes = [4, 1, 8], strides = [1, 1, 1]} : vector<4x4x8xf32> to vector<4x1x8xf32>
    %32 = vector.shape_cast %31 : vector<4x1x8xf32> to vector<4x8xf32>
    %33 = vector.shape_cast %32 : vector<4x8xf32> to vector<1x4x8xf32>
    %34 = vector.extract_strided_slice %0 {offsets = [0, 3, 0], sizes = [2, 1, 8], strides = [1, 1, 1]} : vector<2x4x8xf32> to vector<2x1x8xf32>
    %35 = vector.shape_cast %34 : vector<2x1x8xf32> to vector<2x8xf32>
    %36 = vector.shape_cast %35 : vector<2x8xf32> to vector<2x1x8xf32>
    %37 = vector.broadcast %33 : vector<1x4x8xf32> to vector<2x4x8xf32>
    %38 = vector.broadcast %36 : vector<2x1x8xf32> to vector<2x4x8xf32>
    %39 = arith.mulf %37, %38 : vector<2x4x8xf32>
    %40 = arith.addf %30, %39 : vector<2x4x8xf32>
    %c0_5 = arith.constant 0 : index
    %c0_6 = arith.constant 0 : index
    %c0_7 = arith.constant 0 : index
    %41 = vector.load %arg5[%c0_5, %c0_6, %c0_7] : memref<2x4x8xf32, #tpu.memory_space<vmem>>, vector<2x4x8xf32>
    tpu.vector_store %arg5[%c0_5, %c0_6, %c0_7], %40 {strides = array<i32>} : memref<2x4x8xf32, #tpu.memory_space<vmem>>, vector<2x4x8xf32>,
    %c0_8 = arith.constant 0 : index
    %c0_9 = arith.constant 0 : index
    %c0_10 = arith.constant 0 : index
    %42 = vector.load %arg2[%c0_8, %c0_9, %c0_10] : memref<4x2x8xf32, #tpu.memory_space<vmem>>, vector<4x2x8xf32>
    %c0_11 = arith.constant 0 : index
    %c0_12 = arith.constant 0 : index
    %c0_13 = arith.constant 0 : index
    %43 = vector.load %arg4[%c0_11, %c0_12, %c0_13] : memref<2x2x8xf32, #tpu.memory_space<vmem>>, vector<2x2x8xf32>
    %44 = vector.extract_strided_slice %43 {offsets = [0, 0, 0], sizes = [2, 1, 8], strides = [1, 1, 1]} : vector<2x2x8xf32> to vector<2x1x8xf32>
    %45 = vector.shape_cast %44 : vector<2x1x8xf32> to vector<2x8xf32>
    %46 = vector.shape_cast %45 : vector<2x8xf32> to vector<1x2x8xf32>
    %47 = vector.extract_strided_slice %42 {offsets = [0, 0, 0], sizes = [4, 1, 8], strides = [1, 1, 1]} : vector<4x2x8xf32> to vector<4x1x8xf32>
    %48 = vector.shape_cast %47 : vector<4x1x8xf32> to vector<4x8xf32>
    %49 = vector.shape_cast %48 : vector<4x8xf32> to vector<4x1x8xf32>
    %50 = vector.broadcast %46 : vector<1x2x8xf32> to vector<4x2x8xf32>
    %51 = vector.broadcast %49 : vector<4x1x8xf32> to vector<4x2x8xf32>
    %52 = arith.mulf %50, %51 : vector<4x2x8xf32>
    %53 = vector.extract_strided_slice %43 {offsets = [0, 1, 0], sizes = [2, 1, 8], strides = [1, 1, 1]} : vector<2x2x8xf32> to vector<2x1x8xf32>
    %54 = vector.shape_cast %53 : vector<2x1x8xf32> to vector<2x8xf32>
    %55 = vector.shape_cast %54 : vector<2x8xf32> to vector<1x2x8xf32>
    %56 = vector.extract_strided_slice %42 {offsets = [0, 1, 0], sizes = [4, 1, 8], strides = [1, 1, 1]} : vector<4x2x8xf32> to vector<4x1x8xf32>
    %57 = vector.shape_cast %56 : vector<4x1x8xf32> to vector<4x8xf32>
    %58 = vector.shape_cast %57 : vector<4x8xf32> to vector<4x1x8xf32>
    %59 = vector.broadcast %55 : vector<1x2x8xf32> to vector<4x2x8xf32>
    %60 = vector.broadcast %58 : vector<4x1x8xf32> to vector<4x2x8xf32>
    %61 = arith.mulf %59, %60 : vector<4x2x8xf32>
    %62 = arith.addf %52, %61 : vector<4x2x8xf32>
    %c0_14 = arith.constant 0 : index
    %c0_15 = arith.constant 0 : index
    %c0_16 = arith.constant 0 : index
    %63 = vector.load %arg6[%c0_14, %c0_15, %c0_16] : memref<4x2x8xf32, #tpu.memory_space<vmem>>, vector<4x2x8xf32>
    tpu.vector_store %arg6[%c0_14, %c0_15, %c0_16], %62 {strides = array<i32>} : memref<4x2x8xf32, #tpu.memory_space<vmem>>, vector<4x2x8xf32>,
    return
  }
  func.func @transform_0(%arg0: i32) -> (i32, i32, i32) {
    %c0_i32 = arith.constant 0 : i32
    %c0_i32_0 = arith.constant 0 : i32
    %c0_i32_1 = arith.constant 0 : i32
    return %c0_i32, %c0_i32_0, %arg0 : i32, i32, i32
  }
  func.func @transform_1(%arg0: i32) -> (i32, i32, i32) {
    %c0_i32 = arith.constant 0 : i32
    %c0_i32_0 = arith.constant 0 : i32
    %c0_i32_1 = arith.constant 0 : i32
    return %c0_i32, %c0_i32_0, %arg0 : i32, i32, i32
  }
  func.func @transform_2(%arg0: i32) -> (i32, i32, i32) {
    %c0_i32 = arith.constant 0 : i32
    %c0_i32_0 = arith.constant 0 : i32
    %c0_i32_1 = arith.constant 0 : i32
    return %c0_i32, %c0_i32_0, %arg0 : i32, i32, i32
  }
  func.func @transform_3(%arg0: i32) -> (i32, i32, i32) {
    %c0_i32 = arith.constant 0 : i32
    %c0_i32_0 = arith.constant 0 : i32
    %c0_i32_1 = arith.constant 0 : i32
    return %c0_i32, %c0_i32_0, %arg0 : i32, i32, i32
  }
  func.func @transform_4(%arg0: i32) -> (i32, i32, i32) {
    %c0_i32 = arith.constant 0 : i32
    %c0_i32_0 = arith.constant 0 : i32
    %c0_i32_1 = arith.constant 0 : i32
    return %c0_i32, %c0_i32_0, %arg0 : i32, i32, i32
  }
  func.func @transform_5(%arg0: i32) -> (i32, i32, i32) {
    %c0_i32 = arith.constant 0 : i32
    %c0_i32_0 = arith.constant 0 : i32
    %c0_i32_1 = arith.constant 0 : i32
    return %c0_i32, %c0_i32_0, %arg0 : i32, i32, i32
  }
}

</mosaic_0001>

<bundles_post_ra>
// kernel: tpu_custom_call.1
= control target key start
LH: loop header
LB: loop body
LE: loop exit
PB: predicated region body
PF: predicated region fallthrough
CT: control target
= control target key end

     0   :  { %11 = vsyncpa [#allocation3], 0  ;;  %s697_s0 = inlined_call_operand.hbm [shape: f32[2,4,8], index: 0, kind: input, shape index: {}]   ;;  %s698_s1 = inlined_call_operand.hbm [shape: f32[4,2,8], index: 1, kind: input, shape index: {}]   ;;  %s699_s2 = inlined_call_operand.hbm [shape: f32[4,4,8], index: 2, kind: input, shape index: {}]   ;;  %s700_s3 = inlined_call_operand.vmem [shape: f32[2,2,8], index: 3, kind: input, shape index: {}]   ;;  %s701_s4 = inlined_call_operand.hbm [shape: f32[2,4,8], index: 4, kind: output, shape index: {0}]   ;;  %s702_s5 = inlined_call_operand.hbm [shape: f32[4,2,8], index: 5, kind: output, shape index: {1}]  }
   0x1   :  { %12 = vsyncpa [#allocation6], 0 }
   0x2   :  { %13 = vsyncpa [#allocation4], 0 }
   0x3   :  { %14 = vsyncpa [#allocation10], 0  ;;  %s518_s18 = smov [#allocation5]  }
   0x4   :  { %s32_s19 = sshll.u32 %s518_s18, 4  ;;  %s33_s19 = int_to_ptr.vmem [resolvable:$true] %s32_s19 }
   0x5   :  { %s418_s20 = scalar_lea.vmem %s33_s19, 128  ;;  %p423_p1 = scmp.lt.s32.totalorder %s33_s19, %s33_s19 }
   0x6   :  { %p419_p0 = scmp.ne.s32.totalorder %s33_s19, %s418_s20  ;;  %p424_p2 = scmp.lt.s32.totalorder %s418_s20, %s418_s20 }
   0x8   :  { %p425_p3 = por %p424_p2, %p423_p1 }
   0xa   :  { %p426_p4 = pnand %p425_p3, %p419_p0 }
   0xc   :  { %429 = shalt.err (!%p426_p4)
}
   0xd   :  { %s519_s21 = smov 32   ;;  %s520_s22 = smov 2  }
   0xe   :  { %38 = dma.hbm_to_vmem [thread:$0]  %s698_s1, 128, %s33_s19, [#allocation6], %s519_s21, %s519_s21, %s520_s22  }
   0xf   :  { %s521_s25 = smov [#allocation2]  }
  0x10   :  { %s20_s26 = sshll.u32 %s521_s25, 4  ;;  %s21_s26 = int_to_ptr.vmem [resolvable:$true] %s20_s26 }
  0x11   :  { %s438_s27 = scalar_lea.vmem %s21_s26, 128  ;;  %p443_p6 = scmp.lt.s32.totalorder %s21_s26, %s21_s26 }
  0x12   :  { %p439_p5 = scmp.ne.s32.totalorder %s21_s26, %s438_s27  ;;  %p444_p7 = scmp.lt.s32.totalorder %s438_s27, %s438_s27 }
  0x14   :  { %p445_p8 = por %p444_p7, %p443_p6 }
  0x16   :  { %p446_p9 = pnand %p445_p8, %p439_p5 }
  0x18   :  { %449 = shalt.err (!%p446_p9)
}
  0x19   :  { %s522_s28 = smov 64   ;;  %s523_s29 = smov 4  }
  0x1a   :  { %26 = dma.hbm_to_vmem [thread:$0]  %s697_s0, 128, %s21_s26, [#allocation3], %s522_s28, %s522_s28, %s523_s29  }
  0x1b   :  { %s524_s1 = smov [#allocation7]  }
  0x1c   :  { %s44_s7 = sshll.u32 %s524_s1, 4  ;;  %s45_s7 = int_to_ptr.vmem [resolvable:$true] %s44_s7 }
  0x1d   :  { %s458_s8 = scalar_lea.vmem %s45_s7, 256  ;;  %p463_p11 = scmp.lt.s32.totalorder %s45_s7, %s45_s7 }
  0x1e   :  { %p459_p10 = scmp.ne.s32.totalorder %s45_s7, %s458_s8  ;;  %p464_p12 = scmp.lt.s32.totalorder %s458_s8, %s458_s8 }
  0x20   :  { %p465_p13 = por %p464_p12, %p463_p11 }
  0x22   :  { %p466_p0 = pnand %p465_p13, %p459_p10 }
  0x24   :  { %469 = shalt.err (!%p466_p0)
}
  0x25   :  { %50 = dma.hbm_to_vmem [thread:$0]  %s699_s2, 256, %s45_s7, [#allocation6], %s522_s28, %s522_s28, %s523_s29  }
  0x26   :  { %510 = dma.done.wait [#allocation3], 128  }
  0x27   :  { %511 = vsyncadd [#allocation3], 4294967168 }
  0x28   :  { %512 = dma.done.wait [#allocation6], 384  }
  0x29   :  { %513 = vsyncadd [#allocation6], 4294966912  ;;  %v68_v0 = vlaneseq  ;;  %v62_v6 = vld [vmem:[#allocation2] sm:$0xf]  ;;  %v579_v7 = vld [vmem:[#allocation7] sm:$0xf] }
  0x2a   :  { %v581_v8 = vld [vmem:[#allocation7 + $0x4] sm:$0xf]  ;;  %v583_v9 = vld [vmem:[#allocation7 + $0x8] sm:$0xf]  ;;  %v585_v10 = vld [vmem:[#allocation7 + $0xc] sm:$0xf] }
  0x2b   :  { %v69_v1 = vshrl.u32 %v68_v0, 7  ;;  %v63_v15 = vld [vmem:[#allocation2 + $0x4] sm:$0xf]  ;;  %vm237_vm0 = vcmask 1041409   ;;  %vm240_vm1 = vcmask 1042434   ;;  %vm243_vm2 = vcmask 1043459  }
  0x2c   :  { %vm253_vm3 = vcmask 60416   ;;  %vm362_vm4 = vcmask 58368  }
  0x2d   :  { %v575_v2 = vsub.s32 0, %v69_v1  ;;  %v577_v3 = vsub.s32 1, %v69_v1  ;;  %v134_v4 = vsub.s32 2, %v69_v1  ;;  %v182_v5 = vsub.s32 3, %v69_v1 }
  0x2f   :  { %v71_v11 = vrot.slane %v62_v6, %v575_v2  ;;  %v87_v12 = vrot.slane %v62_v6, %v577_v3  ;;  %v135_v13 = vrot.slane %v62_v6, %v134_v4  ;;  %v183_v14 = vrot.slane %v62_v6, %v182_v5 }
  0x30   :  { %v75_v16 = vrot.slane %v63_v15, %v575_v2  ;;  %v91_v17 = vrot.slane %v63_v15, %v577_v3  ;;  %v591_v18 = vrot.slane %v63_v15, %v134_v4  ;;  %v593_v19 = vrot.slane %v63_v15, %v182_v5 }
  0x31   :  { %v76_v20 = vmul.f32 %v71_v11, %v579_v7  ;;  %v77_v21 = vmul.f32 %v71_v11, %v581_v8  ;;  %v78_v22 = vmul.f32 %v71_v11, %v583_v9  ;;  %v79_v23 = vmul.f32 %v71_v11, %v585_v10 }
  0x32   :  { %v92_v24 = vmul.f32 %v87_v12, %v579_v7  ;;  %v93_v25 = vmul.f32 %v87_v12, %v581_v8  ;;  %v94_v26 = vmul.f32 %v87_v12, %v583_v9  ;;  %v95_v27 = vmul.f32 %v87_v12, %v585_v10 }
  0x33   :  { %v140_v28 = vmul.f32 %v135_v13, %v579_v7  ;;  %v141_v29 = vmul.f32 %v135_v13, %v581_v8  ;;  %v142_v30 = vmul.f32 %v135_v13, %v583_v9  ;;  %v143_v31 = vmul.f32 %v135_v13, %v585_v10 }
  0x34   :  { %v108_v32 = vrot.slane %v92_v24, 1  ;;  %v109_v33 = vrot.slane %v93_v25, 1  ;;  %v110_v34 = vrot.slane %v94_v26, 1  ;;  %v111_v35 = vrot.slane %v95_v27, 1 }
  0x35   :  { %v156_v36 = vrot.slane %v140_v28, 2  ;;  %v157_v37 = vrot.slane %v141_v29, 2  ;;  %v158_v38 = vrot.slane %v142_v30, 2  ;;  %v159_v39 = vrot.slane %v143_v31, 2 }
  0x36   :  { %v124_v40 = vadd.f32 %v108_v32, %v76_v20  ;;  %v125_v41 = vadd.f32 %v109_v33, %v77_v21  ;;  %v126_v42 = vadd.f32 %v110_v34, %v78_v22  ;;  %v127_v43 = vadd.f32 %v111_v35, %v79_v23  ;;  %v256_v35 = vld [vmem:[#allocation5] sm:$0x3] }
  0x37   :  { %v188_v44 = vmul.f32 %v183_v14, %v579_v7  ;;  %v189_v45 = vmul.f32 %v183_v14, %v581_v8  ;;  %v190_v46 = vmul.f32 %v183_v14, %v583_v9  ;;  %v191_v47 = vmul.f32 %v183_v14, %v585_v10 }
  0x38   :  { %v172_v48 = vadd.f32 %v156_v36, %v124_v40  ;;  %v173_v49 = vadd.f32 %v157_v37, %v125_v41  ;;  %v174_v50 = vadd.f32 %v158_v38, %v126_v42  ;;  %v175_v51 = vadd.f32 %v159_v39, %v127_v43  ;;  %v257_v40 = vld [vmem:[#allocation5 + $0x2] sm:$0x3] }
  0x39   :  { %v204_v52 = vrot.slane %v188_v44, 3  ;;  %v205_v53 = vrot.slane %v189_v45, 3  ;;  %v206_v54 = vrot.slane %v190_v46, 3  ;;  %v207_v55 = vrot.slane %v191_v47, 3 }
  0x3a   :  { %v80_v56 = vmul.f32 %v75_v16, %v579_v7  ;;  %v81_v57 = vmul.f32 %v75_v16, %v581_v8  ;;  %v82_v58 = vmul.f32 %v75_v16, %v583_v9  ;;  %v83_v59 = vmul.f32 %v75_v16, %v585_v10 }
  0x3b   :  { %v220_v60 = vadd.f32 %v204_v52, %v172_v48  ;;  %v221_v61 = vadd.f32 %v205_v53, %v173_v49  ;;  %v222_v62 = vadd.f32 %v206_v54, %v174_v50  ;;  %v223_v63 = vadd.f32 %v207_v55, %v175_v51 }
  0x3c   :  { %v96_v0 = vmul.f32 %v91_v17, %v579_v7  ;;  %v97_v1 = vmul.f32 %v91_v17, %v581_v8  ;;  %v98_v4 = vmul.f32 %v91_v17, %v583_v9  ;;  %v99_v5 = vmul.f32 %v91_v17, %v585_v10 }
  0x3d   :  { %v236_v6 = vrot.slane %v221_v61, 7  ;;  %v239_v11 = vrot.slane %v222_v62, 6  ;;  %v242_v12 = vrot.slane %v223_v63, 5  ;;  %v144_v13 = vmul.f32 %v591_v18, %v579_v7 }
  0x3e   :  { %v112_v14 = vrot.slane %v96_v0, 1  ;;  %v113_v15 = vrot.slane %v97_v1, 1  ;;  %v114_v16 = vrot.slane %v98_v4, 1  ;;  %v115_v20 = vrot.slane %v99_v5, 1 }
  0x3f   :  { %v238_v21 = vsel %vm237_vm0, %v236_v6, %v220_v60  ;;  %v145_v22 = vmul.f32 %v591_v18, %v581_v8  ;;  %v146_v23 = vmul.f32 %v591_v18, %v583_v9  ;;  %v147_v17 = vmul.f32 %v591_v18, %v585_v10 }
  0x40   :  { %v241_v24 = vsel %vm240_vm1, %v239_v11, %v238_v21  ;;  %v128_v25 = vadd.f32 %v112_v14, %v80_v56  ;;  %v129_v26 = vadd.f32 %v113_v15, %v81_v57  ;;  %v130_v27 = vadd.f32 %v114_v16, %v82_v58  ;;  %v258_v58 = vld [vmem:[#allocation5 + $0x4] sm:$0x3] }
  0x41   :  { %v244_v28 = vsel %vm243_vm2, %v242_v12, %v241_v24  ;;  %v131_v29 = vadd.f32 %v115_v20, %v83_v59  ;;  %v160_v30 = vrot.slane %v144_v13, 2  ;;  %v161_v31 = vrot.slane %v145_v22, 2  ;;  %v259_v20 = vld [vmem:[#allocation5 + $0x6] sm:$0x3] }
  0x42   :  { %254 = vst.msk [vmem:[#allocation8] sm:$0xf] %vm253_vm3, %v244_v28  ;;  %v162_v32 = vrot.slane %v146_v23, 2  ;;  %v163_v33 = vrot.slane %v147_v17, 2  ;;  %v192_v34 = vmul.f32 %v593_v19, %v579_v7  ;;  %v193_v18 = vmul.f32 %v593_v19, %v581_v8  ;;  %v642_v7 = vld [vmem:[%s700_s3] sm:$0x3] }
  0x43   :  { %v176_v36 = vadd.f32 %v160_v30, %v128_v25  ;;  %v177_v37 = vadd.f32 %v161_v31, %v129_v26  ;;  %v194_v38 = vmul.f32 %v593_v19, %v583_v9  ;;  %v195_v39 = vmul.f32 %v593_v19, %v585_v10  ;;  %v647_v8 = vld [vmem:[%s700_s3 + $0x2] sm:$0x3]  ;;  %s525_s3 = smov [#allocation8]  }
  0x44   :  { %v178_v41 = vadd.f32 %v162_v32, %v130_v27  ;;  %v179_v42 = vadd.f32 %v163_v33, %v131_v29  ;;  %v208_v43 = vrot.slane %v192_v34, 3  ;;  %v209_v44 = vrot.slane %v193_v18, 3  ;;  %s372_s13 = sshll.u32 %s525_s3, 4  ;;  %s373_s13 = int_to_ptr.vmem [resolvable:$true] %s372_s13 }
  0x45   :  { %v210_v45 = vrot.slane %v194_v38, 3  ;;  %v211_v46 = vrot.slane %v195_v39, 3  ;;  %v265_v9 = vrot.slane %v256_v35, %v575_v2  ;;  %v289_v10 = vrot.slane %v256_v35, %v577_v3  ;;  %s470_s14 = scalar_lea.vmem %s373_s13, 128  ;;  %p475_p2 = scmp.lt.s32.totalorder %s373_s13, %s373_s13 }
  0x46   :  { %v224_v19 = vadd.f32 %v208_v43, %v176_v36  ;;  %v225_v47 = vadd.f32 %v209_v44, %v177_v37  ;;  %v269_v48 = vrot.slane %v257_v40, %v575_v2  ;;  %v293_v49 = vrot.slane %v257_v40, %v577_v3  ;;  %p471_p1 = scmp.ne.s32.totalorder %s373_s13, %s470_s14  ;;  %p476_p3 = scmp.lt.s32.totalorder %s470_s14, %s470_s14 }
  0x47   :  { %v226_v50 = vadd.f32 %v210_v45, %v178_v41  ;;  %v227_v51 = vadd.f32 %v211_v46, %v179_v42  ;;  %v278_v52 = vmul.f32 %v265_v9, %v642_v7  ;;  %v279_v53 = vmul.f32 %v265_v9, %v647_v8 }
  0x48   :  { %v245_v54 = vrot.slane %v225_v47, 7  ;;  %v302_v55 = vmul.f32 %v289_v10, %v642_v7  ;;  %v303_v56 = vmul.f32 %v289_v10, %v647_v8  ;;  %v280_v57 = vmul.f32 %v269_v48, %v642_v7  ;;  %p477_p4 = por %p476_p3, %p475_p2 }
  0x49   :  { %v247_v59 = vrot.slane %v226_v50, 6  ;;  %v249_v60 = vrot.slane %v227_v51, 5  ;;  %v281_v61 = vmul.f32 %v269_v48, %v647_v8  ;;  %v304_v62 = vmul.f32 %v293_v49, %v642_v7 }
  0x4a   :  { %v246_v63 = vsel %vm237_vm0, %v245_v54, %v224_v19  ;;  %v318_v0 = vrot.slane %v302_v55, 1  ;;  %v319_v1 = vrot.slane %v303_v56, 1  ;;  %v305_v4 = vmul.f32 %v293_v49, %v647_v8  ;;  %p478_p5 = pnand %p477_p4, %p471_p1 }
  0x4b   :  { %v248_v5 = vsel %vm240_vm1, %v247_v59, %v246_v63  ;;  %v320_v6 = vrot.slane %v304_v62, 1  ;;  %v273_v11 = vrot.slane %v258_v58, %v575_v2  ;;  %v297_v12 = vrot.slane %v258_v58, %v577_v3 }
  0x4c   :  { %v250_v13 = vsel %vm243_vm2, %v249_v60, %v248_v5  ;;  %v334_v14 = vadd.f32 %v318_v0, %v278_v52  ;;  %v335_v15 = vadd.f32 %v319_v1, %v279_v53  ;;  %v321_v16 = vrot.slane %v305_v4, 1 }
  0x4d   :  { %255 = vst.msk [vmem:[#allocation8 + $0x4] sm:$0xf] %vm253_vm3, %v250_v13  ;;  %v336_v21 = vadd.f32 %v320_v6, %v280_v57  ;;  %v282_v22 = vmul.f32 %v273_v11, %v642_v7  ;;  %v283_v23 = vmul.f32 %v273_v11, %v647_v8  ;;  %v306_v17 = vmul.f32 %v297_v12, %v642_v7 }
  0x4e   :  { %v350_v24 = vrot.slane %v335_v15, 7  ;;  %v337_v25 = vadd.f32 %v321_v16, %v281_v61  ;;  %v307_v26 = vmul.f32 %v297_v12, %v647_v8  ;;  %v277_v27 = vrot.slane %v259_v20, %v575_v2 }
  0x4f   :  { %481 = shalt.err (!%p478_p5)
}
  0x50   :  { %378 = dma.vmem_to_hbm [thread:$0]  %s373_s13, 128, %s701_s4, [#allocation4], %s522_s28, %s522_s28, %s523_s29   ;;  %v322_v28 = vrot.slane %v306_v17, 1  ;;  %v301_v29 = vrot.slane %v259_v20, %v577_v3  ;;  %v351_v30 = vsel %vm237_vm0, %v350_v24, %v334_v14  ;;  %v352_v2 = vrot.slane %v337_v25, 7 }
  0x51   :  { %v323_v31 = vrot.slane %v307_v26, 1  ;;  %363 = vst.msk [vmem:[#allocation9] sm:$0x3] %vm362_vm4, %v351_v30  ;;  %v284_v32 = vmul.f32 %v277_v27, %v642_v7  ;;  %v285_v33 = vmul.f32 %v277_v27, %v647_v8  ;;  %s526_s4 = smov [#allocation9]  }
  0x52   :  { %v308_v34 = vmul.f32 %v301_v29, %v642_v7  ;;  %v309_v18 = vmul.f32 %v301_v29, %v647_v8  ;;  %v353_v35 = vsel %vm237_vm0, %v352_v2, %v336_v21  ;;  %v338_v36 = vadd.f32 %v322_v28, %v282_v22  ;;  %s384_s17 = sshll.u32 %s526_s4, 4  ;;  %s385_s17 = int_to_ptr.vmem [resolvable:$true] %s384_s17 }
  0x53   :  { %v339_v37 = vadd.f32 %v323_v31, %v283_v23  ;;  %364 = vst.msk [vmem:[#allocation9 + $0x2] sm:$0x3] %vm362_vm4, %v353_v35  ;;  %s490_s18 = scalar_lea.vmem %s385_s17, 128  ;;  %p495_p7 = scmp.lt.s32.totalorder %s385_s17, %s385_s17 }
  0x54   :  { %v324_v3 = vrot.slane %v308_v34, 1  ;;  %v325_v38 = vrot.slane %v309_v18, 1  ;;  %p491_p6 = scmp.ne.s32.totalorder %s385_s17, %s490_s18  ;;  %p496_p8 = scmp.lt.s32.totalorder %s490_s18, %s490_s18 }
  0x55   :  { %v354_v39 = vrot.slane %v339_v37, 7 }
  0x56   :  { %v340_v40 = vadd.f32 %v324_v3, %v284_v32  ;;  %v341_v41 = vadd.f32 %v325_v38, %v285_v33  ;;  %p497_p9 = por %p496_p8, %p495_p7 }
  0x57   :  { %v355_v42 = vsel %vm237_vm0, %v354_v39, %v338_v36 }
  0x58   :  { %365 = vst.msk [vmem:[#allocation9 + $0x4] sm:$0x3] %vm362_vm4, %v355_v42  ;;  %v356_v43 = vrot.slane %v341_v41, 7  ;;  %p498_p10 = pnand %p497_p9, %p491_p6 }
  0x5a   :  { %v357_v44 = vsel %vm237_vm0, %v356_v43, %v340_v40 }
  0x5b   :  { %366 = vst.msk [vmem:[#allocation9 + $0x6] sm:$0x3] %vm362_vm4, %v357_v44 }
  0x5c   :  { %501 = shalt.err (!%p498_p10)
}
  0x5d   :  { %390 = dma.vmem_to_hbm [thread:$0]  %s385_s17, 128, %s702_s5, [#allocation10], %s519_s21, %s519_s21, %s520_s22  }
  0x5e   :  { %514 = dma.done.wait [#allocation4], 128  }
  0x5f   :  { %515 = vsyncadd [#allocation4], 4294967168 }
  0x60   :  { %516 = dma.done.wait [#allocation10], 128  }
  0x61   :  { %517 = vsyncadd [#allocation10], 4294967168 }
  0x62   :  { %397 = vsyncpa [#allocation3], 1 }
  0x63   :  { %398 = vsyncpa [#allocation6], 1 }
  0x64   :  { %399 = vsyncpa [#allocation4], 1 }
  0x65   :  { %400 = vsyncpa [#allocation10], 1 }

</bundles_post_ra>
